<compile_context>
chip_gen: v6e
topology: v6e:2x2x1
jax: 0.10.0
libtpu: 0.0.40
codegen_flags: <defaults>
</compile_context>

<pallas_src>
import functools

import jax
import jax.numpy as jnp
from jax.experimental import pallas as pl
from jax.experimental.pallas import tpu as pltpu


def _make_offset_coeff(start=0.0, stop=4.0, num_gaussians=20, type_="exp"):
    """Deterministic parameter init mirroring GaussianSmearing.__init__."""
    if type_ == "exp":
        offset = jnp.exp(
            jnp.linspace(jnp.log(start + 1.0), jnp.log(stop + 1.0), num_gaussians)
        ) - 1.0
    elif type_ == "linear":
        offset = jnp.linspace(start, stop, num_gaussians)
    else:
        raise NotImplementedError("type_ must be either exp or linear")
    diff = jnp.diff(offset)
    diff = jnp.concatenate([diff[:1], diff])
    coeff = -0.5 / diff**2
    return offset.astype(jnp.float32), coeff.astype(jnp.float32)


def _device_defaults():
    """(tile_n, min_grid_steps, compute_dtype) tuned per TPU generation."""
    kind = ""
    try:
        kind = str(jax.devices()[0].device_kind).lower()
    except Exception:
        pass
    is_v7 = "v7" in kind
    bf16_ok = ("v6" in kind) or is_v7           # v5e has no bf16 VPU/EUP paths
    tile_n = 65536 if is_v7 else 32768
    min_grid = 2 if is_v7 else 1                # split work across v7x's 2 TCs
    compute_dtype = jnp.bfloat16 if bf16_ok else jnp.float32
    return tile_n, min_grid, compute_dtype


def _pick_tile_n(n, tile_n, min_grid):
    """Round to 128 lanes, cap at the padded problem size, keep >= min_grid steps."""
    tile_n = max(128, (int(tile_n) // 128) * 128)
    n_pad = pl.cdiv(n, 128) * 128
    tile_n = min(tile_n, n_pad)
    if min_grid > 1 and n_pad >= min_grid * 128:
        tile_n = min(tile_n, pl.cdiv(pl.cdiv(n, min_grid), 128) * 128)
    return tile_n


# --------------------------------------------------------------------------
# Kernel 1: standalone smearing, lane-dense (G, N) output, no transpose.
# --------------------------------------------------------------------------
def _gaussian_smearing_kernel(dist_ref, offset_ref, coeff_ref, out_ref, *, compute_dtype):
    # dist_ref:   (1, TN)  lane-tile of distances (native dtype, upcast here)
    # offset_ref: (G, 1)   Gaussian centers        (broadcast across lanes)
    # coeff_ref:  (G, 1)   -0.5 / width^2
    # out_ref:    (G, TN)  lane-dense output tile (unmasked vst in the interior)
    d = dist_ref[...].astype(jnp.float32)
    diff = (d - offset_ref[...]).astype(compute_dtype)       # f32 subtract, then narrow
    c = coeff_ref[...].astype(compute_dtype)
    out_ref[...] = jnp.exp(c * diff * diff).astype(out_ref.dtype)   # EUP exp


def gaussian_smearing_t(dist, *, start=0.0, stop=4.0, num_gaussians=20, type_="exp",
                        tile_n=None, out_dtype=jnp.bfloat16, compute_dtype=None):
    """Lane-dense Gaussian smearing.

    Returns the TRANSPOSED (num_gaussians, N) feature tensor (N = dist.size):
    the large axis stays on the 128-lane axis and no XLA transpose is emitted.
    Downstream consumers contract it as W[H, G] @ feat[G, N] (see the fused
    kernel below).  Values match GaussianSmearing.forward:
        exp(coeff * (d - offset)^2)   (no clamp).
    """
    dflt_tile, min_grid, dflt_cdtype = _device_defaults()
    if tile_n is None:
        tile_n = dflt_tile
    if compute_dtype is None:
        compute_dtype = dflt_cdtype

    offset, coeff = _make_offset_coeff(start, stop, num_gaussians, type_)
    d_flat = jnp.ravel(dist)                    # keep native dtype; upcast in-kernel
    n = d_flat.shape[0]
    d_row = d_flat.reshape(1, n)
    offset_col = offset.reshape(num_gaussians, 1)
    coeff_col = coeff.reshape(num_gaussians, 1)

    tile_n = _pick_tile_n(n, tile_n, min_grid)
    grid = (pl.cdiv(n, tile_n),)                # partial last block is masked by Pallas
    kernel = functools.partial(_gaussian_smearing_kernel, compute_dtype=compute_dtype)

    return pl.pallas_call(
        kernel,
        out_shape=jax.ShapeDtypeStruct((num_gaussians, n), out_dtype),
        grid=grid,
        in_specs=[
            pl.BlockSpec((1, tile_n), lambda i: (0, i)),            # dense lane DMA
            pl.BlockSpec((num_gaussians, 1), lambda i: (0, 0)),     # fetched once
            pl.BlockSpec((num_gaussians, 1), lambda i: (0, 0)),     # fetched once
        ],
        out_specs=pl.BlockSpec((num_gaussians, tile_n), lambda i: (0, i)),
        compiler_params=pltpu.CompilerParams(
            dimension_semantics=("parallel",),
        ),
    )(d_row, offset_col, coeff_col)


# --------------------------------------------------------------------------
# Kernel 2: smearing fused into the next Linear (edge-MLP distance slice).
# The (G, TN) smearing tile only ever lives in VMEM.
# --------------------------------------------------------------------------
def _fused_smearing_linear_kernel(dist_ref, offset_ref, coeff_ref, w_ref, b_ref,
                                  out_ref, *, compute_dtype):
    # dist_ref: (1, TN); offset/coeff: (G, 1); w_ref: (H, G); b_ref: (H, 1)
    # out_ref:  (H, TN) = W @ exp(coeff * (d - offset)^2) + b   (lane-dense in N)
    d = dist_ref[...].astype(jnp.float32)
    diff = (d - offset_ref[...]).astype(compute_dtype)
    smear = jnp.exp(coeff_ref[...].astype(compute_dtype) * diff * diff)   # (G, TN), VMEM only
    acc = jnp.dot(w_ref[...].astype(compute_dtype), smear,
                  preferred_element_type=jnp.float32)                     # MXU, K = G
    out_ref[...] = (acc + b_ref[...]).astype(out_ref.dtype)


def fused_smearing_linear_t(dist, weight, bias=None, *, start=0.0, stop=4.0,
                            num_gaussians=20, type_="exp", tile_n=None,
                            out_dtype=None, compute_dtype=None):
    """Gaussian smearing fused with a Linear(num_gaussians -> H).

    out[h, n] = sum_g weight[h, g] * exp(coeff_g * (d_n - offset_g)^2) + bias[h]

    Equivalent to (smearing(dist) @ weight.T + bias).T, but the (G, N) smearing
    features never touch HBM.  Output is lane-dense (H, N).
    """
    dflt_tile, min_grid, dflt_cdtype = _device_defaults()
    if tile_n is None:
        tile_n = min(dflt_tile, 4096)           # (H, TN) output tile; keep VMEM modest
    if compute_dtype is None:
        compute_dtype = dflt_cdtype
    if out_dtype is None:
        out_dtype = weight.dtype

    h_dim, g = weight.shape
    assert g == num_gaussians, (g, num_gaussians)
    if bias is None:
        bias = jnp.zeros((h_dim,), dtype=jnp.float32)

    offset, coeff = _make_offset_coeff(start, stop, num_gaussians, type_)
    d_flat = jnp.ravel(dist)
    n = d_flat.shape[0]
    d_row = d_flat.reshape(1, n)
    offset_col = offset.reshape(num_gaussians, 1)
    coeff_col = coeff.reshape(num_gaussians, 1)
    bias_col = bias.reshape(h_dim, 1).astype(jnp.float32)

    tile_n = _pick_tile_n(n, tile_n, min_grid)
    grid = (pl.cdiv(n, tile_n),)
    kernel = functools.partial(_fused_smearing_linear_kernel, compute_dtype=compute_dtype)

    return pl.pallas_call(
        kernel,
        out_shape=jax.ShapeDtypeStruct((h_dim, n), out_dtype),
        grid=grid,
        in_specs=[
            pl.BlockSpec((1, tile_n), lambda i: (0, i)),             # dense lane DMA
            pl.BlockSpec((num_gaussians, 1), lambda i: (0, 0)),      # fetched once
            pl.BlockSpec((num_gaussians, 1), lambda i: (0, 0)),      # fetched once
            pl.BlockSpec((h_dim, num_gaussians), lambda i: (0, 0)),  # W, fetched once
            pl.BlockSpec((h_dim, 1), lambda i: (0, 0)),              # b, fetched once
        ],
        out_specs=pl.BlockSpec((h_dim, tile_n), lambda i: (0, i)),
        compiler_params=pltpu.CompilerParams(
            dimension_semantics=("parallel",),
        ),
    )(d_row, offset_col, coeff_col, weight, bias_col)


# --------------------------------------------------------------------------
# Pure-JAX references (no clamp, matching GaussianSmearing.forward).
# --------------------------------------------------------------------------
def _reference_smearing(dist, *, start=0.0, stop=4.0, num_gaussians=20, type_="exp"):
    offset, coeff = _make_offset_coeff(start, stop, num_gaussians, type_)
    d = jnp.ravel(dist).astype(jnp.float32).reshape(-1, 1)
    diff = d - offset.reshape(1, -1)
    return jnp.exp(coeff.reshape(1, -1) * diff * diff)      # (N, G)


if __name__ == "__main__":
    key = jax.random.PRNGKey(0)
    # Small synthetic batch of pairwise edge distances (2 graphs x 300 edges).
    # 600 is deliberately NOT a multiple of the lane tile so the masked partial
    # last block path is exercised.
    dist = jax.random.uniform(key, (2, 300), minval=0.0, maxval=5.0, dtype=jnp.float32)
    ref = _reference_smearing(dist)                          # (600, 20) f32

    # (1) Multi-step grid with a partial final lane block, exact f32 path.
    out_f32 = gaussian_smearing_t(dist, tile_n=256,
                                  out_dtype=jnp.float32, compute_dtype=jnp.float32)
    out_f32 = jax.block_until_ready(out_f32)
    assert out_f32.shape == (20, 600), out_f32.shape
    assert jnp.allclose(out_f32.T, ref, atol=1e-5, rtol=1e-5), "mismatch (f32 tiled path)"

    # (2) Default perf path: generation-tuned tile, bf16 stores (bf16 compute on v6e/v7x).
    out_def = jax.block_until_ready(gaussian_smearing_t(dist))
    assert out_def.shape == (20, 600), out_def.shape
    assert jnp.allclose(out_def.T.astype(jnp.float32), ref, atol=2e-2, rtol=2e-2), \
        "mismatch (default bf16 path)"

    # (3) Fused smearing + Linear(20 -> hidden_dim=256), as in the EGNN edge MLP.
    hidden_dim = 256
    kw, kb = jax.random.split(jax.random.PRNGKey(1))
    w = jax.random.normal(kw, (hidden_dim, 20), dtype=jnp.float32) * 0.1
    b = jax.random.normal(kb, (hidden_dim,), dtype=jnp.float32) * 0.1
    ref_lin = ref @ w.T + b                                  # (600, 256)

    fused_f32 = fused_smearing_linear_t(dist, w, b, tile_n=256,
                                        out_dtype=jnp.float32, compute_dtype=jnp.float32)
    fused_f32 = jax.block_until_ready(fused_f32)
    assert fused_f32.shape == (hidden_dim, 600), fused_f32.shape
    assert jnp.allclose(fused_f32.T, ref_lin, atol=1e-4, rtol=1e-4), "mismatch (fused f32)"

    fused_def = jax.block_until_ready(fused_smearing_linear_t(dist, w, b))
    assert fused_def.shape == (hidden_dim, 600), fused_def.shape
    assert jnp.allclose(fused_def.T.astype(jnp.float32), ref_lin, atol=5e-2, rtol=5e-2), \
        "mismatch (fused default path)"

    print("KERNEL_OK")
</pallas_src>

<mosaic_0001>
module attributes {stable_mosaic.version = 11 : i64} {
  func.func @_gaussian_smearing_kernel(%arg0: i32, %arg1: memref<1x256xf32, #tpu.memory_space<vmem>>, %arg2: memref<20x1xf32, #tpu.memory_space<vmem>>, %arg3: memref<20x1xf32, #tpu.memory_space<vmem>>, %arg4: memref<20x256xf32, #tpu.memory_space<vmem>>) attributes {dimension_semantics = [#tpu.dimension_semantics<parallel>], iteration_bounds = array<i64: 3>, scalar_prefetch = 0 : i64, scratch_operands = 0 : i64, tpu.core_type = #tpu.core_type<tc>, window_params = [{transform_indices = @transform_0, window_bounds = array<i64: 1, 256>}, {pipeline_mode = #tpu.pipeline_mode<synchronous>, transform_indices = @transform_1, window_bounds = array<i64: 20, 1>}, {pipeline_mode = #tpu.pipeline_mode<synchronous>, transform_indices = @transform_2, window_bounds = array<i64: 20, 1>}, {transform_indices = @transform_3, window_bounds = array<i64: 20, 256>}]} {
    %c0 = arith.constant 0 : index
    %c0_0 = arith.constant 0 : index
    %0 = vector.load %arg1[%c0, %c0_0] : memref<1x256xf32, #tpu.memory_space<vmem>>, vector<1x256xf32>
    %c0_1 = arith.constant 0 : index
    %c0_2 = arith.constant 0 : index
    %1 = vector.load %arg2[%c0_1, %c0_2] : memref<20x1xf32, #tpu.memory_space<vmem>>, vector<20x1xf32>
    %2 = vector.broadcast %0 : vector<1x256xf32> to vector<20x256xf32>
    %3 = vector.broadcast %1 : vector<20x1xf32> to vector<20x256xf32>
    %4 = arith.subf %2, %3 : vector<20x256xf32>
    %c0_3 = arith.constant 0 : index
    %c0_4 = arith.constant 0 : index
    %5 = vector.load %arg3[%c0_3, %c0_4] : memref<20x1xf32, #tpu.memory_space<vmem>>, vector<20x1xf32>
    %6 = vector.broadcast %5 : vector<20x1xf32> to vector<20x256xf32>
    %7 = arith.mulf %6, %4 : vector<20x256xf32>
    %8 = arith.mulf %7, %4 : vector<20x256xf32>
    %9 = math.exp %8 : vector<20x256xf32>
    %c0_5 = arith.constant 0 : index
    %c0_6 = arith.constant 0 : index
    %10 = vector.load %arg4[%c0_5, %c0_6] : memref<20x256xf32, #tpu.memory_space<vmem>>, vector<20x256xf32>
    tpu.vector_store %arg4[%c0_5, %c0_6], %9 {strides = array<i32>} : memref<20x256xf32, #tpu.memory_space<vmem>>, vector<20x256xf32>,
    return
  }
  func.func @transform_0(%arg0: i32) -> (i32, i32) {
    %c0_i32 = arith.constant 0 : i32
    %c0_i32_0 = arith.constant 0 : i32
    return %c0_i32, %arg0 : i32, i32
  }
  func.func @transform_1(%arg0: i32) -> (i32, i32) {
    %c0_i32 = arith.constant 0 : i32
    %c0_i32_0 = arith.constant 0 : i32
    %c0_i32_1 = arith.constant 0 : i32
    return %c0_i32, %c0_i32_0 : i32, i32
  }
  func.func @transform_2(%arg0: i32) -> (i32, i32) {
    %c0_i32 = arith.constant 0 : i32
    %c0_i32_0 = arith.constant 0 : i32
    %c0_i32_1 = arith.constant 0 : i32
    return %c0_i32, %c0_i32_0 : i32, i32
  }
  func.func @transform_3(%arg0: i32) -> (i32, i32) {
    %c0_i32 = arith.constant 0 : i32
    %c0_i32_0 = arith.constant 0 : i32
    return %c0_i32, %arg0 : i32, i32
  }
}

</mosaic_0001>

<bundles_post_ra>
// kernel: tpu_custom_call.1
= control target key start
LH: loop header
LB: loop body
LE: loop exit
PB: predicated region body
PF: predicated region fallthrough
CT: control target
= control target key end

     0   :  { %8 = vsyncpa [#allocation3], 0  ;;  %s657_s0 = inlined_call_operand.vmem [shape: f32[1,600], index: 0, kind: input, shape index: {}]   ;;  %s658_s1 = inlined_call_operand.vmem [shape: f32[20,1], index: 1, kind: input, shape index: {}]   ;;  %s659_s2 = inlined_call_operand.vmem [shape: f32[20,1], index: 2, kind: input, shape index: {}]   ;;  %s660_s3 = inlined_call_operand.hbm [shape: f32[20,600], index: 3, kind: output, shape index: {}]  }
   0x1   :  { %10 = vsyncpa [#allocation3 + $0x1], 0  ;;  %s513_s12 = smov 0   ;;  %s515_s13 = smov 0  }
   0x2   :  { %s517_s14 = smov 0   ;;  %s519_s15 = smov 0  }
   0x3 LB: > { %s534_s16 = sadd.s32 4294967295, %s487_s15   ;;  %s357_s17 = sadd.s32 4294967294, %s487_s15   ;;  %s487_s15 = sphi %s519_s15, %s666_s15   ;;  %s483_s14 = sphi %s517_s14, %s665_s14   ;;  %s479_s13 = sphi %s515_s13, %s664_s13   ;;  %s475_s12 = sphi %s513_s12, %s663_s12  }
   0x4   : > { %s538_s18 = sadd.s32 1, %s487_s15   ;;  %s91_s19 = sadd.s32 1, %s483_s14 }
   0x5   : > { %s88_s20 = ssub.s32 %s487_s15, %s538_s18  ;;  %p101_p0 = scmp.ne.s32.totalorder %s483_s14, %s479_s13 }
   0x6   : > { %p89_p1 = scmp.eq.s32.totalorder %s88_s20, 0  ;;  %p102_p2 = scmp.eq.s32.totalorder %s534_s16, 2 }
   0x7   : > { %p107_p3 = scmp.ne.s32.totalorder %s479_s13, %s475_s12  ;;  %p108_p4 = scmp.eq.s32.totalorder %s357_s17, 2 }
   0x8   : > { %s549_s21 = scalar_select %p89_p1, %s483_s14, %s91_s19  }
   0x9   : > { %p551_p5 = por %p102_p2, %p101_p0  ;;  %p555_p6 = por %p108_p4, %p107_p3 }
   0xa   : > { %p360_p7 = scmp.ge.s32.totalorder %s487_s15, 1  ;;  %p148_p8 = scmp.lt.s32.totalorder %s487_s15, 4 }
   0xc   : > { %p149_p9 = pnand %p360_p7, %p148_p8 }
   0xd   : > { %s172_s9 = sand.u32 (!%p149_p9), 1, %s479_s13   ;;  %s581_s10 = sshll.u32 (!%p149_p9), %s534_s16, 1 }
   0xe   : > { %152 = sbr.rel (%p149_p9) target bundleno = 206 (0xce), region = 32  ;;  %p180_p10 = scmp.lt.s32.totalorder (!%p149_p9), %s581_s10, 4 }
   0xf   : > { %s371_s24 = smul.u32 (!%p149_p9), 48, %s172_s9  ;;  %s592_s26 = scalar_lea.sflag (!%p149_p9), [#allocation3], %s172_s9 }
  0x11   : > { %s174_s25 = scalar_lea.vmem (!%p149_p9), [#allocation2], %s371_s24 }
  0x13   : > { %v196_v0 = vld [vmem:[%s658_s1 + $0x10] sm:$0xf]  ;;  %v194_v1 = vld [vmem:[%s658_s1] sm:$0xff]  ;;  %v489_v2 = vmov 0   ;;  %v195_v4 = vld [vmem:[%s658_s1 + $0x8] sm:$0xff]  ;;  %v198_v7 = vlaneseq  ;;  %s181_s11 = scalar_select %p180_p10, %s581_s10, 4 }
  0x14   : > { %414 = vset.pattern.permute.xlu1 %v489_v2  ;;  %413 = vset.pattern.permute.xlu0 %v489_v2  ;;  %v229_v3 = vld [vmem:[%s659_s2] sm:$0xff]  ;;  %v231_v5 = vld [vmem:[%s659_s2 + $0x10] sm:$0xf]  ;;  %v230_v6 = vld [vmem:[%s659_s2 + $0x8] sm:$0xff]  ;;  %s286_s27 = ssub.s32 (%p551_p5), 5, %s581_s10 }
  0x15   : > { %220 = vperm.xlu1 %414, %v196_v0   ;;  %210 = vperm.xlu0 %413, %v194_v1   ;;  %v199_v8 = vshrl.u32 %v198_v7, 7  ;;  %s182_s20 = scalar_lea.vmem %s657_s0, %s181_s11  ;;  %p287_p11 = scmp.lt.s32.totalorder (%p551_p5), %s286_s27, 2 }
  0x16   : > { %v193_v11 = vld [vmem:[%s182_s20] sm:$0x3] }
  0x17   : > { %v200_v9 = vsub.s32 0, %v199_v8  ;;  %v204_v10 = vsub.s32 1, %v199_v8 }
  0x19   : > { %234 = vperm.xlu1 %414, %v229_v3   ;;  %215 = vperm.xlu0 %413, %v195_v4   ;;  %v201_v12 = vrot.slane %v193_v11, %v200_v9  ;;  %v205_v13 = vrot.slane %v193_v11, %v204_v10 }
  0x1d   : > { %244 = vperm.xlu1 %414, %v231_v5   ;;  %239 = vperm.xlu0 %413, %v230_v6  }
  0x90   : > { %v221_v14 = vpop.permute.xlu1 %220  ;;  %v211_v15 = vpop.permute.xlu0 %210 }
  0x91   : > { %v223_v16 = vsub.f32 %v201_v12, %v211_v15  ;;  %v224_v17 = vsub.f32 %v205_v13, %v211_v15  ;;  %v227_v22 = vsub.f32 %v201_v12, %v221_v14  ;;  %v228_v23 = vsub.f32 %v205_v13, %v221_v14 }
  0x94   : > { %v235_v18 = vpop.permute.xlu1 %234  ;;  %v216_v19 = vpop.permute.xlu0 %215 }
  0x95   : > { %v247_v20 = vmul.f32 %v235_v18, %v223_v16  ;;  %v248_v21 = vmul.f32 %v235_v18, %v224_v17  ;;  %v225_v26 = vsub.f32 %v201_v12, %v216_v19  ;;  %v226_v27 = vsub.f32 %v205_v13, %v216_v19 }
  0x97   : > { %v253_v24 = vmul.f32 %v247_v20, %v223_v16  ;;  %v254_v25 = vmul.f32 %v248_v21, %v224_v17 }
  0x98   : > { %v245_v28 = vpop.permute.xlu1 %244  ;;  %v240_v29 = vpop.permute.xlu0 %239 }
  0x99   : > { %v259_v30 = vmul.f32 1.442695, %v253_v24  ;;  %v261_v31 = vmul.f32 1.442695, %v254_v25  ;;  %v251_v32 = vmul.f32 %v245_v28, %v227_v22  ;;  %v252_v33 = vmul.f32 %v245_v28, %v228_v23 }
  0x9a   : > { %v249_v34 = vmul.f32 %v240_v29, %v225_v26  ;;  %v250_v35 = vmul.f32 %v240_v29, %v226_v27 }
  0x9b   : > { %415 = vpow2.f32 %v259_v30  ;;  %v257_v36 = vmul.f32 %v251_v32, %v227_v22  ;;  %v258_v37 = vmul.f32 %v252_v33, %v228_v23 }
  0x9c   : > { %417 = vpow2.f32 %v261_v31  ;;  %v255_v38 = vmul.f32 %v249_v34, %v225_v26  ;;  %v256_v39 = vmul.f32 %v250_v35, %v226_v27 }
  0x9d   : > { %v267_v40 = vmul.f32 1.442695, %v257_v36  ;;  %v269_v41 = vmul.f32 1.442695, %v258_v37 }
  0x9e   : > { %v263_v42 = vmul.f32 1.442695, %v255_v38  ;;  %v265_v43 = vmul.f32 1.442695, %v256_v39 }
  0x9f   : > { %419 = vpow2.f32 %v267_v40 }
  0xa0   : > { %421 = vpow2.f32 %v269_v41 }
  0xa1   : > { %423 = vpow2.f32 %v263_v42 }
  0xa2   : > { %425 = vpow2.f32 %v265_v43 }
  0xa8   : > { %v416_v44 = vpop.eup %415 }
  0xa9   : > { %v418_v45 = vpop.eup %417  ;;  %271 = vst [vmem:[%s174_s25] sm:$0xff] %v416_v44 }
  0xaa   : > { %272 = vst [vmem:[%s174_s25 + $0x8] sm:$0xff] %v418_v45 }
  0xac   : > { %v420_v46 = vpop.eup %419  ;;  %284 = sbr.rel (!%p551_p5) target bundleno = 206 (0xce), region = 36 }
  0xad   : > { %v422_v47 = vpop.eup %421  ;;  %275 = vst [vmem:[%s174_s25 + $0x20] sm:$0xf] %v420_v46 }
  0xae   : > { %v424_v48 = vpop.eup %423  ;;  %276 = vst [vmem:[%s174_s25 + $0x28] sm:$0xf] %v422_v47 }
  0xaf   : > { %v426_v49 = vpop.eup %425  ;;  %273 = vst [vmem:[%s174_s25 + $0x10] sm:$0xff] %v424_v48 }
  0xb0   : > { %274 = vst [vmem:[%s174_s25 + $0x18] sm:$0xff] %v426_v49 }
  0xb1   : > { %s668_s27 = smov (!%p287_p11, %s286_s27), 2 }
  0xb2   : > { %s600_s28 = smul.u32 384, %s668_s27 }
  0xb4   : > { %s291_s29 = ssub.s32 768, %s600_s28 }
  0xb5   : > { %292 = vsyncadd %s592_s26, %s291_s29  ;;  %p363_p12 = scmp.ne.s32.totalorder %s600_s28, 0  ;;  %s370_s22 = sshll.u32 %s534_s16, 8 }
  0xb6   : > { %s609_s5 = scalar_lea.hbm %s660_s3, %s370_s22  ;;  %s365_s6 = sshll.u32 %s668_s27, 3 }
  0xb7   : > { %s298_s7 = sshll.u32 %s174_s25, 4  ;;  %s490_s9 = smov [#allocation2]   ;;  %s612_s7 = int_to_ptr.vmem [resolvable:$true] %s298_s7 }
  0xb8   : > { %s427_s8 = scalar_lea.vmem %s612_s7, %s600_s28  ;;  %s431_s10 = sshll.u32 %s490_s9, 4  ;;  %s432_s10 = int_to_ptr.vmem [resolvable:$false] %s431_s10 }
  0xb9   : > { %p428_p13 = scmp.ne.s32.totalorder %s612_s7, %s427_s8  ;;  %s433_s16 = scalar_lea.vmem %s432_s10, 1536 }
  0xba   : > { %p434_p2 = scmp.lt.s32.totalorder %s612_s7, %s432_s10  ;;  %p435_p3 = scmp.lt.s32.totalorder %s433_s16, %s427_s8 }
  0xbb   : > { %p429_p0 = pnand %p428_p13, %p363_p12 }
  0xbc   : > { %p436_p4 = por %p435_p3, %p434_p2 }
  0xbd   : > { %p430_p1 = pneg %p429_p0 }
  0xbf   : > { %p437_p5 = pnand %p436_p4, %p430_p1 }
  0xc1   : > { %440 = shalt.err (!%p437_p5)
}
  0xc2   : > { %s441_s11 = scalar_lea.hbm %s609_s5, %s600_s28  ;;  %s445_s20 = scalar_lea.hbm %s660_s3, 1920 }
  0xc3   : > { %p442_p7 = scmp.ne.s32.totalorder %s609_s5, %s441_s11  ;;  %p446_p10 = scmp.lt.s32.totalorder %s609_s5, %s660_s3 }
  0xc4   : > { %p447_p11 = scmp.lt.s32.totalorder %s445_s20, %s441_s11 }
  0xc5   : > { %p443_p8 = pnand %p442_p7, %p363_p12 }
  0xc6   : > { %p448_p13 = por %p447_p11, %p446_p10 }
  0xc7   : > { %p444_p9 = pneg %p443_p8 }
  0xc9   : > { %p449_p0 = pnand %p448_p13, %p444_p9 }
  0xcb   : > { %452 = shalt.err (!%p449_p0)
}
  0xcc   : > { %s491_s29 = smov 256   ;;  %s492_s22 = smov 640  }
  0xcd   : > { %304 = dma.vmem_to_hbm [thread:$0]  (%p363_p12), %s612_s7, %s600_s28, %s609_s5, %s592_s26, %s491_s29, %s492_s22, %s365_s6  }
  0xce PF: > { %p377_p1 = scmp.ge.s32.totalorder %s487_s15, 2  ;;  %s313_s30 = sand.u32 1, %s475_s12  }
  0xcf   : > { %s314_s4 = scalar_lea.sflag [#allocation3], %s313_s30 }
  0xd0   : > { %p374_p2 = pnand %p377_p1, %p555_p6 }
  0xd2   : > { %p375_p3 = pneg %p374_p2 }
  0xd4   : > { %470 = dma.done.wait (%p375_p3), %s314_s4, 768  }
  0xd5   : > { %472 = vsyncadd (%p375_p3), %s314_s4, 4294966528  ;;  %p13_p4 = scmp.ge.s32.totalorder %s538_s18, 5   ;;  %s663_s12 = smov %s479_s13 }
  0xd6   : > { %s664_s13 = smov %s483_s14  ;;  %s665_s14 = smov %s549_s21 }
  0xd7   : > { %s666_s15 = smov %s538_s18  ;;  %15 = sbr.rel (!%p13_p4) target bundleno = 3 (0x3), region = 67 }
  0xdc   :  { %319 = vsyncpa [#allocation3], 1 }
  0xdd   :  { %321 = vsyncpa [#allocation3 + $0x1], 1 }

</bundles_post_ra>
